<compile_context>
chip_gen: v5e
topology: v5e:2x2
jax: 0.10.0
libtpu: 0.0.40
codegen_flags: <defaults>
</compile_context>

<pallas_src>
import functools
import math

import jax
import jax.numpy as jnp
from jax import lax
from jax.experimental import pallas as pl
from jax.experimental.pallas import tpu as pltpu


def _nt_xent_kernel(rows_ref, cols_ref, out_ref,
                    rows_pn_ref, m_ref, l_ref, pos_ref,
                    *, batch_size, block, inv_sqrt_temp, inv_two_n,
                    compute_dtype):
    N = batch_size
    B = block
    r = pl.program_id(0)
    c = pl.program_id(1)
    num_col_blocks = pl.num_programs(1)
    scale = jnp.float32(inv_sqrt_temp)

    # ---- per-row-block init (first column step) --------------------------
    @pl.when(c == 0)
    def _():
        m_ref[...] = jnp.full(m_ref.shape, -jnp.inf, dtype=jnp.float32)
        l_ref[...] = jnp.zeros(l_ref.shape, dtype=jnp.float32)
        pos_ref[...] = jnp.zeros(pos_ref.shape, dtype=jnp.float32)
        pr = rows_ref[...].astype(jnp.float32)
        inv = lax.rsqrt(jnp.maximum(jnp.sum(pr * pr, axis=-1, keepdims=True),
                                    jnp.float32(1e-16)))  # norm clamp @ 1e-8
        rows_pn_ref[...] = (pr * (inv * scale)).astype(compute_dtype)

    # ---- normalize the current column block (temperature folded in) ------
    pc = cols_ref[...].astype(jnp.float32)
    invc = lax.rsqrt(jnp.maximum(jnp.sum(pc * pc, axis=-1, keepdims=True),
                                 jnp.float32(1e-16)))
    pn_c = (pc * (invc * scale)).astype(compute_dtype)

    # ---- sim tile (B, B): contract last dim of both operands (no .T) -----
    s = lax.dot_general(rows_pn_ref[...], pn_c,
                        dimension_numbers=(((1,), (1,)), ((), ())),
                        preferred_element_type=jnp.float32)

    li = lax.broadcasted_iota(jnp.int32, (B, B), 0)
    lj = lax.broadcasted_iota(jnp.int32, (B, B), 1)
    local_diag = li == lj

    # ---- positive logits: partner columns of row block r live entirely in
    #      column block c_pos, exactly on the local diagonal of that tile.
    c_pos = (r + N // B) % ((2 * N) // B)

    @pl.when(c == c_pos)
    def _():
        pos_ref[...] = jnp.sum(jnp.where(local_diag, s, 0.0),
                               axis=-1, keepdims=True)

    # ---- mask the self-similarity diagonal (only possible when c == r) ---
    s = jnp.where(jnp.logical_and(r == c, local_diag), -jnp.inf, s)

    # ---- online logsumexp over j != i -------------------------------------
    m_prev = m_ref[...]
    m_new = jnp.maximum(m_prev, jnp.max(s, axis=-1, keepdims=True))
    l_ref[...] = (jnp.exp(m_prev - m_new) * l_ref[...]
                  + jnp.sum(jnp.exp(s - m_new), axis=-1, keepdims=True))
    m_ref[...] = m_new

    # ---- finalize: per-row loss contribution, already divided by 2N -------
    @pl.when(c == num_col_blocks - 1)
    def _():
        lse = m_ref[...] + jnp.log(l_ref[...])
        out_ref[...] = (lse - pos_ref[...]) * jnp.float32(inv_two_n)


def _pick_block(n):
    for b in (512, 256, 128, 64, 32, 16, 8):
        if n % b == 0:
            return b
    # TODO(synk): support batch sizes not divisible by 8 (needs pad + mask).
    raise ValueError(f"batch_size={n} must be divisible by 8")


def contrastive_loss(z_i, z_j, temperature, *, use_bf16_matmul=False,
                     block_size=None):
    """NT-Xent loss matching the PyTorch ContrastiveLoss.forward."""
    N, D = z_i.shape
    assert z_j.shape == (N, D)
    B = block_size if block_size is not None else _pick_block(N)
    assert N % B == 0 and B % 8 == 0
    two_n = 2 * N

    # Stack once in the wrapper (no in-kernel concat); keep the input dtype,
    # norms are upcast to f32 inside the kernel.
    p = jnp.concatenate([z_i, z_j], axis=0)  # (2N, D)

    compute_dtype = jnp.bfloat16 if use_bf16_matmul else jnp.float32
    kernel = functools.partial(
        _nt_xent_kernel,
        batch_size=N,
        block=B,
        inv_sqrt_temp=1.0 / math.sqrt(float(temperature)),
        inv_two_n=1.0 / float(two_n),
        compute_dtype=compute_dtype,
    )

    grid = (two_n // B, two_n // B)
    per_row = pl.pallas_call(
        kernel,
        out_shape=jax.ShapeDtypeStruct((two_n, 1), jnp.float32),
        grid_spec=pltpu.PrefetchScalarGridSpec(
            num_scalar_prefetch=0,
            grid=grid,
            in_specs=[
                pl.BlockSpec((B, D), lambda r, c: (r, 0)),  # row block of p
                pl.BlockSpec((B, D), lambda r, c: (c, 0)),  # column block of p
            ],
            out_specs=pl.BlockSpec((B, 1), lambda r, c: (r, 0)),
            scratch_shapes=[
                pltpu.VMEM((B, D), compute_dtype),  # normalized row block
                pltpu.VMEM((B, 1), jnp.float32),    # running max  m
                pltpu.VMEM((B, 1), jnp.float32),    # running sum  l
                pltpu.VMEM((B, 1), jnp.float32),    # positive logits
            ],
        ),
        compiler_params=pltpu.CompilerParams(
            dimension_semantics=("parallel", "arbitrary"),
            vmem_limit_bytes=32 * 1024 * 1024,
        ),
    )(p, p)
    return jnp.sum(per_row)


def _reference_loss(z_i, z_j, temperature):
    # Pure-JAX reference mirroring the PyTorch module.
    N = z_i.shape[0]
    p = jnp.concatenate([z_i, z_j], axis=0).astype(jnp.float32)
    pn = p / jnp.maximum(jnp.linalg.norm(p, axis=-1, keepdims=True), 1e-8)
    sim = (pn @ pn.T) / temperature
    two_n = 2 * N
    idx = jnp.arange(two_n)
    pos = sim[idx, (idx + N) % two_n]
    sim_m = jnp.where(jnp.eye(two_n, dtype=bool), -jnp.inf, sim)
    lse = jax.scipy.special.logsumexp(sim_m, axis=-1)
    return jnp.sum(lse - pos) / two_n


if __name__ == "__main__":
    batch_size = 8
    hidden = 32
    temperature = 0.5

    key = jax.random.PRNGKey(0)
    k1, k2 = jax.random.split(key)
    z_i = jax.random.normal(k1, (batch_size, hidden), dtype=jnp.float32)
    z_j = jax.random.normal(k2, (batch_size, hidden), dtype=jnp.float32)

    ref = _reference_loss(z_i, z_j, temperature)

    # Default (f32 MXU operands): exact match with the reference.
    loss = jax.block_until_ready(contrastive_loss(z_i, z_j, temperature))
    assert jnp.allclose(loss, ref, rtol=1e-4, atol=1e-4), (loss, ref)

    # bf16 MXU operands (v6e/v7x fast path): looser tolerance.
    loss_bf16 = jax.block_until_ready(
        contrastive_loss(z_i, z_j, temperature, use_bf16_matmul=True))
    assert jnp.allclose(loss_bf16, ref, rtol=2e-2, atol=1e-1), (loss_bf16, ref)

    print("KERNEL_OK")
</pallas_src>

<mosaic_0001>
module attributes {stable_mosaic.version = 11 : i64} {
  func.func @_nt_xent_kernel(%arg0: i32, %arg1: i32, %arg2: memref<8x32xf32, #tpu.memory_space<vmem>>, %arg3: memref<8x32xf32, #tpu.memory_space<vmem>>, %arg4: memref<8x1xf32, #tpu.memory_space<vmem>>, %arg5: memref<8x32xf32, #tpu.memory_space<vmem>>, %arg6: memref<8x1xf32, #tpu.memory_space<vmem>>, %arg7: memref<8x1xf32, #tpu.memory_space<vmem>>, %arg8: memref<8x1xf32, #tpu.memory_space<vmem>>) attributes {dimension_semantics = [#tpu.dimension_semantics<parallel>, #tpu.dimension_semantics<arbitrary>], iteration_bounds = array<i64: 2, 2>, scalar_prefetch = 0 : i64, scratch_operands = 4 : i64, tpu.core_type = #tpu.core_type<tc>, window_params = [{transform_indices = @transform_0, window_bounds = array<i64: 8, 32>}, {transform_indices = @transform_1, window_bounds = array<i64: 8, 32>}, {transform_indices = @transform_2, window_bounds = array<i64: 8, 1>}]} {
    %c0_i32 = arith.constant 0 : i32
    %0 = arith.cmpi eq, %arg1, %c0_i32 : i32
    %1 = arith.extui %0 : i1 to i32
    %cst = arith.constant 1.41421354 : f32
    %c0_i32_0 = arith.constant 0 : i32
    %2 = arith.cmpi ne, %1, %c0_i32_0 : i32
    scf.if %2 {
      %cst_27 = arith.constant 0xFF800000 : f32
      %57 = vector.broadcast %cst_27 : f32 to vector<8x1xf32>
      %c0_28 = arith.constant 0 : index
      %c0_29 = arith.constant 0 : index
      %58 = vector.load %arg6[%c0_28, %c0_29] : memref<8x1xf32, #tpu.memory_space<vmem>>, vector<8x1xf32>
      tpu.vector_store %arg6[%c0_28, %c0_29], %57 {strides = array<i32>} : memref<8x1xf32, #tpu.memory_space<vmem>>, vector<8x1xf32>,
      %cst_30 = arith.constant 0.000000e+00 : f32
      %59 = vector.broadcast %cst_30 : f32 to vector<8x1xf32>
      %c0_31 = arith.constant 0 : index
      %c0_32 = arith.constant 0 : index
      %60 = vector.load %arg7[%c0_31, %c0_32] : memref<8x1xf32, #tpu.memory_space<vmem>>, vector<8x1xf32>
      tpu.vector_store %arg7[%c0_31, %c0_32], %59 {strides = array<i32>} : memref<8x1xf32, #tpu.memory_space<vmem>>, vector<8x1xf32>,
      %cst_33 = arith.constant 0.000000e+00 : f32
      %61 = vector.broadcast %cst_33 : f32 to vector<8x1xf32>
      %c0_34 = arith.constant 0 : index
      %c0_35 = arith.constant 0 : index
      %62 = vector.load %arg8[%c0_34, %c0_35] : memref<8x1xf32, #tpu.memory_space<vmem>>, vector<8x1xf32>
      tpu.vector_store %arg8[%c0_34, %c0_35], %61 {strides = array<i32>} : memref<8x1xf32, #tpu.memory_space<vmem>>, vector<8x1xf32>,
      %c0_36 = arith.constant 0 : index
      %c0_37 = arith.constant 0 : index
      %63 = vector.load %arg2[%c0_36, %c0_37] : memref<8x32xf32, #tpu.memory_space<vmem>>, vector<8x32xf32>
      %64 = arith.mulf %63, %63 : vector<8x32xf32>
      %cst_38 = arith.constant dense<0.000000e+00> : vector<8xf32>
      %65 = vector.multi_reduction <add>, %64, %cst_38 [1] : vector<8x32xf32> to vector<8xf32>
      %66 = vector.shape_cast %65 : vector<8xf32> to vector<8x1xf32>
      %cst_39 = arith.constant 1.000000e-16 : f32
      %67 = vector.broadcast %cst_39 : f32 to vector<8x1xf32>
      %68 = arith.maximumf %66, %67 : vector<8x1xf32>
      %69 = math.rsqrt %68 : vector<8x1xf32>
      %70 = vector.broadcast %cst : f32 to vector<8x1xf32>
      %71 = arith.mulf %69, %70 : vector<8x1xf32>
      %72 = vector.broadcast %71 : vector<8x1xf32> to vector<8x32xf32>
      %73 = arith.mulf %63, %72 : vector<8x32xf32>
      %c0_40 = arith.constant 0 : index
      %c0_41 = arith.constant 0 : index
      %74 = vector.load %arg5[%c0_40, %c0_41] : memref<8x32xf32, #tpu.memory_space<vmem>>, vector<8x32xf32>
      tpu.vector_store %arg5[%c0_40, %c0_41], %73 {strides = array<i32>} : memref<8x32xf32, #tpu.memory_space<vmem>>, vector<8x32xf32>,
    } else {
    }
    %c0 = arith.constant 0 : index
    %c0_1 = arith.constant 0 : index
    %3 = vector.load %arg3[%c0, %c0_1] : memref<8x32xf32, #tpu.memory_space<vmem>>, vector<8x32xf32>
    %4 = arith.mulf %3, %3 : vector<8x32xf32>
    %cst_2 = arith.constant dense<0.000000e+00> : vector<8xf32>
    %5 = vector.multi_reduction <add>, %4, %cst_2 [1] : vector<8x32xf32> to vector<8xf32>
    %6 = vector.shape_cast %5 : vector<8xf32> to vector<8x1xf32>
    %cst_3 = arith.constant 1.000000e-16 : f32
    %7 = vector.broadcast %cst_3 : f32 to vector<8x1xf32>
    %8 = arith.maximumf %6, %7 : vector<8x1xf32>
    %9 = math.rsqrt %8 : vector<8x1xf32>
    %cst_4 = arith.constant 1.41421354 : f32
    %10 = vector.broadcast %cst_4 : f32 to vector<8x1xf32>
    %11 = arith.mulf %9, %10 : vector<8x1xf32>
    %12 = vector.broadcast %11 : vector<8x1xf32> to vector<8x32xf32>
    %13 = arith.mulf %3, %12 : vector<8x32xf32>
    %c0_5 = arith.constant 0 : index
    %c0_6 = arith.constant 0 : index
    %14 = vector.load %arg5[%c0_5, %c0_6] : memref<8x32xf32, #tpu.memory_space<vmem>>, vector<8x32xf32>
    %cst_7 = arith.constant dense<0.000000e+00> : vector<8x8xf32>
    %15 = tpu.matmul %14, %13, %cst_7 {dimension_numbers = #tpu.dot_dimension_numbers<[1], [1], [0], [0], [0, 0, 1, 0], [], []>} : vector<8x32xf32>, vector<8x32xf32>, vector<8x8xf32> -> vector<8x8xf32>
    %16 = tpu.iota {dimensions = array<i32: 0>} : vector<8x8xi32>
    %17 = tpu.iota {dimensions = array<i32: 1>} : vector<8x8xi32>
    %18 = arith.cmpi eq, %16, %17 : vector<8x8xi32>
    %c1_i32 = arith.constant 1 : i32
    %19 = arith.addi %arg0, %c1_i32 : i32
    %c2_i32 = arith.constant 2 : i32
    %c0_i32_8 = arith.constant 0 : i32
    %20 = arith.cmpi eq, %c2_i32, %c0_i32_8 : i32
    %c1_i32_9 = arith.constant 1 : i32
    %21 = arith.select %20, %c1_i32_9, %c2_i32 : i32
    %22 = arith.remsi %19, %21 : i32
    %c0_i32_10 = arith.constant 0 : i32
    %23 = arith.cmpi ne, %22, %c0_i32_10 : i32
    %c0_i32_11 = arith.constant 0 : i32
    %24 = arith.cmpi slt, %22, %c0_i32_11 : i32
    %c0_i32_12 = arith.constant 0 : i32
    %25 = arith.cmpi slt, %21, %c0_i32_12 : i32
    %26 = arith.xori %24, %25 : i1
    %27 = arith.andi %26, %23 : i1
    %28 = arith.addi %22, %21 : i32
    %29 = arith.select %27, %28, %22 : i32
    %30 = arith.cmpi eq, %arg1, %29 : i32
    %31 = arith.extui %30 : i1 to i32
    %c0_i32_13 = arith.constant 0 : i32
    %32 = arith.cmpi ne, %31, %c0_i32_13 : i32
    scf.if %32 {
      %cst_27 = arith.constant 0.000000e+00 : f32
      %57 = vector.broadcast %cst_27 : f32 to vector<8x8xf32>
      %58 = arith.select %18, %15, %57 : vector<8x8xi1>, vector<8x8xf32>
      %cst_28 = arith.constant dense<0.000000e+00> : vector<8xf32>
      %59 = vector.multi_reduction <add>, %58, %cst_28 [1] : vector<8x8xf32> to vector<8xf32>
      %60 = vector.shape_cast %59 : vector<8xf32> to vector<8x1xf32>
      %c0_29 = arith.constant 0 : index
      %c0_30 = arith.constant 0 : index
      %61 = vector.load %arg8[%c0_29, %c0_30] : memref<8x1xf32, #tpu.memory_space<vmem>>, vector<8x1xf32>
      tpu.vector_store %arg8[%c0_29, %c0_30], %60 {strides = array<i32>} : memref<8x1xf32, #tpu.memory_space<vmem>>, vector<8x1xf32>,
    } else {
    }
    %33 = arith.cmpi eq, %arg0, %arg1 : i32
    %34 = vector.broadcast %33 : i1 to vector<8x8xi1>
    %35 = arith.andi %34, %18 : vector<8x8xi1>
    %cst_14 = arith.constant 0xFF800000 : f32
    %36 = vector.broadcast %cst_14 : f32 to vector<8x8xf32>
    %37 = arith.select %35, %36, %15 : vector<8x8xi1>, vector<8x8xf32>
    %c0_15 = arith.constant 0 : index
    %c0_16 = arith.constant 0 : index
    %38 = vector.load %arg6[%c0_15, %c0_16] : memref<8x1xf32, #tpu.memory_space<vmem>>, vector<8x1xf32>
    %cst_17 = arith.constant dense<0xFF800000> : vector<8xf32>
    %39 = vector.multi_reduction <maximumf>, %37, %cst_17 [1] : vector<8x8xf32> to vector<8xf32>
    %40 = vector.shape_cast %39 : vector<8xf32> to vector<8x1xf32>
    %41 = arith.maximumf %38, %40 : vector<8x1xf32>
    %42 = arith.subf %38, %41 : vector<8x1xf32>
    %43 = math.exp %42 : vector<8x1xf32>
    %c0_18 = arith.constant 0 : index
    %c0_19 = arith.constant 0 : index
    %44 = vector.load %arg7[%c0_18, %c0_19] : memref<8x1xf32, #tpu.memory_space<vmem>>, vector<8x1xf32>
    %45 = arith.mulf %43, %44 : vector<8x1xf32>
    %46 = vector.broadcast %41 : vector<8x1xf32> to vector<8x8xf32>
    %47 = arith.subf %37, %46 : vector<8x8xf32>
    %48 = math.exp %47 : vector<8x8xf32>
    %cst_20 = arith.constant dense<0.000000e+00> : vector<8xf32>
    %49 = vector.multi_reduction <add>, %48, %cst_20 [1] : vector<8x8xf32> to vector<8xf32>
    %50 = vector.shape_cast %49 : vector<8xf32> to vector<8x1xf32>
    %51 = arith.addf %45, %50 : vector<8x1xf32>
    %c0_21 = arith.constant 0 : index
    %c0_22 = arith.constant 0 : index
    %52 = vector.load %arg7[%c0_21, %c0_22] : memref<8x1xf32, #tpu.memory_space<vmem>>, vector<8x1xf32>
    tpu.vector_store %arg7[%c0_21, %c0_22], %51 {strides = array<i32>} : memref<8x1xf32, #tpu.memory_space<vmem>>, vector<8x1xf32>,
    %c0_23 = arith.constant 0 : index
    %c0_24 = arith.constant 0 : index
    %53 = vector.load %arg6[%c0_23, %c0_24] : memref<8x1xf32, #tpu.memory_space<vmem>>, vector<8x1xf32>
    tpu.vector_store %arg6[%c0_23, %c0_24], %41 {strides = array<i32>} : memref<8x1xf32, #tpu.memory_space<vmem>>, vector<8x1xf32>,
    %c1_i32_25 = arith.constant 1 : i32
    %54 = arith.cmpi eq, %arg1, %c1_i32_25 : i32
    %55 = arith.extui %54 : i1 to i32
    %c0_i32_26 = arith.constant 0 : i32
    %56 = arith.cmpi ne, %55, %c0_i32_26 : i32
    scf.if %56 {
      %c0_27 = arith.constant 0 : index
      %c0_28 = arith.constant 0 : index
      %57 = vector.load %arg6[%c0_27, %c0_28] : memref<8x1xf32, #tpu.memory_space<vmem>>, vector<8x1xf32>
      %c0_29 = arith.constant 0 : index
      %c0_30 = arith.constant 0 : index
      %58 = vector.load %arg7[%c0_29, %c0_30] : memref<8x1xf32, #tpu.memory_space<vmem>>, vector<8x1xf32>
      %59 = math.log %58 : vector<8x1xf32>
      %60 = arith.addf %57, %59 : vector<8x1xf32>
      %c0_31 = arith.constant 0 : index
      %c0_32 = arith.constant 0 : index
      %61 = vector.load %arg8[%c0_31, %c0_32] : memref<8x1xf32, #tpu.memory_space<vmem>>, vector<8x1xf32>
      %62 = arith.subf %60, %61 : vector<8x1xf32>
      %cst_33 = arith.constant 6.250000e-02 : f32
      %63 = vector.broadcast %cst_33 : f32 to vector<8x1xf32>
      %64 = arith.mulf %62, %63 : vector<8x1xf32>
      %c0_34 = arith.constant 0 : index
      %c0_35 = arith.constant 0 : index
      %65 = vector.load %arg4[%c0_34, %c0_35] : memref<8x1xf32, #tpu.memory_space<vmem>>, vector<8x1xf32>
      tpu.vector_store %arg4[%c0_34, %c0_35], %64 {strides = array<i32>} : memref<8x1xf32, #tpu.memory_space<vmem>>, vector<8x1xf32>,
    } else {
    }
    return
  }
  func.func @transform_0(%arg0: i32, %arg1: i32) -> (i32, i32) {
    %c0_i32 = arith.constant 0 : i32
    %c0_i32_0 = arith.constant 0 : i32
    return %arg0, %c0_i32 : i32, i32
  }
  func.func @transform_1(%arg0: i32, %arg1: i32) -> (i32, i32) {
    %c0_i32 = arith.constant 0 : i32
    %c0_i32_0 = arith.constant 0 : i32
    return %arg1, %c0_i32 : i32, i32
  }
  func.func @transform_2(%arg0: i32, %arg1: i32) -> (i32, i32) {
    %c0_i32 = arith.constant 0 : i32
    %c0_i32_0 = arith.constant 0 : i32
    return %arg0, %c0_i32 : i32, i32
  }
}

</mosaic_0001>

<bundles_post_ra>
// kernel: tpu_custom_call.1
= control target key start
LH: loop header
LB: loop body
LE: loop exit
PB: predicated region body
PF: predicated region fallthrough
CT: control target
= control target key end

     0   :  { %s977_s0 = inlined_call_operand.hbm [shape: f32[16,32], index: 0, kind: input, shape index: {}]   ;;  %s978_s1 = inlined_call_operand.hbm [shape: f32[16,32], index: 1, kind: input, shape index: {}]   ;;  %s979_s2 = inlined_call_operand.vmem [shape: f32[16,1], index: 2, kind: output, shape index: {}]  }
   0x1   :  { %980 = sst [smem:[#allocation12_spill]] %s977_s0 }
   0x2   :  { %7 = vsyncpa [#allocation7], 0 }
   0x3   :  { %9 = vsyncpa [#allocation7 + $0x1], 0 }
   0x4   :  { %10 = vsyncpa [#allocation9], 0 }
   0x5   :  { %12 = vsyncpa [#allocation9 + $0x1], 0  ;;  %s769_s9 = smov 0   ;;  %s771_s10 = smov 0  }
   0x6   :  { %s773_s11 = smov 0   ;;  %s775_s12 = smov 0  }
   0x7   :  { %s777_s13 = smov 0   ;;  %s779_s14 = smov 0  }
   0x8   :  { %s781_s15 = smov 0   ;;  %s783_s16 = smov 0  }
   0x9   :  { %s785_s17 = smov 0   ;;  %s787_s18 = smov 0  }
   0xa   :  { %s789_s19 = smov 0  }
   0xb LB: > { %s459_s20 = sadd.s32 4294967295, %s749_s19   ;;  %s30_s21 = sadd.s32 1, %s745_s18  ;;  %s749_s19 = sphi %s789_s19, %s18_s19   ;;  %s745_s18 = sphi %s787_s18, %s996_s18   ;;  %s741_s17 = sphi %s785_s17, %s995_s17   ;;  %s737_s16 = sphi %s783_s16, %s994_s16   ;;  %s733_s15 = sphi %s781_s15, %s993_s15   ;;  %s729_s14 = sphi %s779_s14, %s992_s14   ;;  %s725_s13 = sphi %s777_s13, %s991_s13   ;;  %s721_s12 = sphi %s775_s12, %s990_s12   ;;  %s717_s11 = sphi %s773_s11, %s989_s11   ;;  %s713_s10 = sphi %s771_s10, %s988_s10   ;;  %s709_s9 = sphi %s769_s9, %s987_s9  }
   0xc   : > { %s37_s22 = sadd.s32 1, %s729_s14  ;;  %p44_p0 = scmp.ne.s32.totalorder %s729_s14, %s725_s13 }
   0xd   : > { %p45_p1 = scmp.eq.s32.totalorder %s749_s19, 0  ;;  %p50_p2 = scmp.ne.s32.totalorder %s725_s13, %s721_s12 }
   0xe   : > { %p829_p3 = scmp.eq.s32.totalorder %s459_s20, 0  ;;  %p492_p5 = scmp.lt.s32.totalorder %s749_s19, 4 }
   0xf   : > { %p46_p4 = por %p45_p1, %p44_p0  ;;  %s126_s25 = sand.u32 1, %s729_s14  }
  0x10   : > { %p838_p6 = por %p829_p3, %p50_p2  ;;  %s463_s26 = sshll.u32 %s126_s25, 3 }
  0x11   : > { %s464_s27 = sshll.u32 %s745_s18, 3  ;;  %s983_s0 = sld [smem:[#allocation12_spill]] }
  0x12   : > { %s130_s3 = scalar_lea.vmem [#allocation6], %s463_s26  ;;  %p486_p7 = pnand %p492_p5, %p46_p4 }
  0x13   : > { %s138_s4 = sshll.u32 %s130_s3, 4  ;;  %p467_p8 = scmp.ge.s32.totalorder %s749_s19, 1  ;;  %s139_s4 = int_to_ptr.vmem [resolvable:$true] %s138_s4 }
  0x14   : > { %p162_p9 = scmp.lt.s32.totalorder %s749_s19, 5  ;;  %s127_s6 = scalar_lea.sflag [#allocation7], %s126_s25 }
  0x15   : > { %s27_s8 = sadd.s32 1, %s741_s17  ;;  %s63_s12 = sadd.s32 1, %s717_s11 }
  0x16   : > { %p851_p10 = pnand %p467_p8, %p162_p9  ;;  %p28_p11 = scmp.ge.s32.totalorder %s27_s8, 2 }
  0x17   : > { %s134_s30 = scalar_lea.hbm %s983_s0, %s464_s27  ;;  %p70_p12 = scmp.ne.s32.totalorder %s717_s11, %s713_s10 }
  0x18   : > { %s136_s5 = sshll.u32 %s134_s30, 4  ;;  %p76_p13 = scmp.ne.s32.totalorder %s713_s10, %s709_s9  ;;  %s137_s5 = int_to_ptr.hbm [resolvable:$true] %s136_s5 }
  0x19   : > { %488 = dma.hbm_to_vmem [thread:$0]  (!%p486_p7), %s137_s5, 128, %s139_s4, %s127_s6  }
  0x1a   : > { %s145_s20 = sand.u32 1, %s717_s11   ;;  %s998_s8 = smov (%p28_p11, %s27_s8), 0 }
  0x1b   : > { %s1000_s21 = smov (!%p28_p11, %s30_s21), %s745_s18  ;;  %s60_s25 = ssub.s32 %s741_s17, %s998_s8 }
  0x1c   : > { %p871_p0 = por %p70_p12, %p45_p1  ;;  %p32_p2 = scmp.ge.s32.totalorder %s1000_s21, 2 }
  0x1d   : > { %p61_p4 = scmp.eq.s32.totalorder %s60_s25, 0  ;;  %p877_p7 = por %p76_p13, %p829_p3 }
  0x1e   : > { %s1002_s21 = smov (%p32_p2, %s1000_s21), 0  ;;  %s465_s29 = sshll.u32 %s145_s20, 3 }
  0x1f   : > { %s884_s27 = scalar_select %p61_p4, %s717_s11, %s63_s12  }
  0x20   : > { %s34_s28 = ssub.s32 %s745_s18, %s1002_s21  ;;  %s466_s30 = sshll.u32 %s741_s17, 3 }
  0x21   : > { %p35_p1 = scmp.eq.s32.totalorder %s34_s28, 0  ;;  %s149_s3 = scalar_lea.vmem [#allocation8], %s465_s29 }
  0x22   : > { %s157_s4 = sshll.u32 %s149_s3, 4  ;;  %s153_s25 = scalar_lea.hbm %s978_s1, %s466_s30  ;;  %s158_s4 = int_to_ptr.vmem [resolvable:$true] %s157_s4 }
  0x23   : > { %s892_s5 = scalar_select %p35_p1, %s729_s14, %s37_s22  }
  0x24   : > { %s155_s0 = sshll.u32 %s153_s25, 4  ;;  %p489_p3 = pnand %p492_p5, %p871_p0  ;;  %s156_s0 = int_to_ptr.hbm [resolvable:$true] %s155_s0 }
  0x25   : > { %s146_s12 = scalar_lea.sflag [#allocation9], %s145_s20  ;;  %166 = sbr.rel (%p851_p10) target bundleno = 988 (0x3dc), region = 28 }
  0x26   : > { %491 = dma.hbm_to_vmem [thread:$0]  (!%p489_p3), %s156_s0, 128, %s158_s4, %s146_s12  }
  0x27   : > { %s168_s28 = sand.u32 (!%p851_p10), 1, %s725_s13  }
  0x28   : > { %s468_s22 = sshll.u32 (!%p851_p10), %s168_s28, 3  ;;  %s169_s29 = scalar_lea.sflag (!%p851_p10), [#allocation7], %s168_s28 }
  0x29   : > { %s172_s3 = scalar_lea.vmem (!%p851_p10), [#allocation6], %s468_s22 }
  0x2a   : > { %700 = dma.done.wait (%p838_p6), %s169_s29, 128  }
  0x2b   : > { %702 = vsyncadd (%p838_p6), %s169_s29, 4294967168  ;;  %s178_s26 = sand.u32 1, %s713_s10  }
  0x2c   : > { %s909_s30 = sshll.u32 %s178_s26, 3  ;;  %s179_s0 = scalar_lea.sflag [#allocation9], %s178_s26 }
  0x2d   : > { %s182_s7 = scalar_lea.vmem [#allocation8], %s909_s30 }
  0x2e   : > { %704 = dma.done.wait (%p877_p7), %s179_s0, 128  }
  0x2f   : > { %706 = vsyncadd (%p877_p7), %s179_s0, 4294967168  ;;  %p208_p5 = scmp.lt.s32.totalorder %s737_s16, 1  ;;  %p471_p6 = scmp.ne.s32.totalorder %s733_s15, 0 }
  0x31   : > { %s209_s20 = scalar_select %p208_p5, %s737_s16, 1 }
  0x32   : > { %215 = sbr.rel (%p471_p6) target bundleno = 200 (0xc8), region = 40 }
  0x33   : > { %s470_s4 = sshll.u32 %s209_s20, 3 }
  0x34   : > { %s921_s23 = scalar_lea.vmem %s979_s2, %s470_s4 }
  0x37   : > { %vm216_vm0 = vcmask 7168   ;;  %v220_v0 = vld [vmem:[%s172_s3] sm:$0xff]  ;;  %vm222_vm1 = vcmask 261120   ;;  %v751_v1 = vmov -inf   ;;  %v752_v3 = vmov 0.0  }
  0x38   : > { %217 = vst.msk [vmem:[#allocation3] sm:$0xff] %vm216_vm0, %v751_v1  ;;  %v221_v2 = vmul.f32 %v220_v0, %v220_v0 }
  0x39   : > { %218 = vst.msk [vmem:[#allocation4] sm:$0xff] %vm216_vm0, %v752_v3 }
  0x3a   : > { %219 = vst.msk [vmem:[#allocation5] sm:$0xff] %vm216_vm0, %v752_v3  ;;  %v223_v4 = vsel %vm222_vm1, %v221_v2, 0.0 }
  0x3b   : > { %224 = vadd.xlane.f32.xlu0 %v223_v4 }
  0xae   : > { %v225_v5 = vpop.xlane.xlu0 %224 }
  0xaf   : > { %v226_v6 = vmax.f32 %v225_v5, 1e-16 }
  0xb1   : > { %584 = vrsqrt.f32 %v226_v6  ;;  %vm233_vm3 = vweird.f32 %v226_v6 }
  0xb7   : > { %v585_v7 = vpop.eup %584 }
  0xb8   : > { %v228_v8 = vmul.f32 %v585_v7, %v226_v6  ;;  %vm234_vm2 = vweird.f32 %v585_v7 }
  0xb9   : > { %vm235_vm4 = vmor %vm233_vm3, %vm234_vm2 }
  0xba   : > { %v229_v9 = vmul.f32 %v585_v7, %v228_v8 }
  0xbc   : > { %v230_v10 = vmul.f32 0.5, %v229_v9 }
  0xbe   : > { %v231_v11 = vsub.f32 1.5, %v230_v10 }
  0xc0   : > { %v232_v12 = vmul.f32 %v585_v7, %v231_v11 }
  0xc2   : > { %v236_v13 = vsel %vm235_vm4, %v585_v7, %v232_v12 }
  0xc3   : > { %v237_v14 = vmul.f32 1.4142135, %v236_v13 }
  0xc5   : > { %v238_v15 = vmul.f32 %v237_v14, %v220_v0 }
  0xc7   : > { %239 = vst.msk [vmem:[#allocation2] sm:$0xff] %vm222_vm1, %v238_v15 }
  0xc8 PF: > { %v240_v16 = vld [vmem:[%s182_s7] sm:$0xff]  ;;  %vm242_vm5 = vcmask 261120   ;;  %s291_s9 = sadd.s32 1, %s737_s16  ;;  %v286_v31 = vlaneseq }
  0xc9   : > { %v241_v17 = vmul.f32 %v240_v16, %v240_v16  ;;  %s293_s25 = ssub.s32 0, %s291_s9  ;;  %p292_p8 = scmp.lt.s32.totalorder %s291_s9, 0 }
  0xca   : > { %s474_s12 = smin.u32 %s293_s25, %s291_s9  ;;  %v287_v32 = vshrl.u32 %v286_v31, 7  ;;  %v289_v33 = vand.u32 127, %v286_v31 }
  0xcb   : > { %v243_v18 = vsel %vm242_vm5, %v241_v17, 0.0  ;;  %s295_s28 = sand.u32 1, %s474_s12  }
  0xcc   : > { %244 = vadd.xlane.f32.xlu0 %v243_v18  ;;  %s296_s22 = ssub.s32 0, %s295_s28  ;;  %vm290_vm9 = vcmp.eq.s32.totalorder %v287_v32, %v289_v33 }
  0xcd   : > { %s1004_s22 = smov (!%p292_p8, %s296_s22), %s295_s28 }
  0xce   : > { %p476_p9 = scmp.lt.s32.totalorder %s1004_s22, 0  ;;  %s302_s29 = sadd.s32 2, %s1004_s22  ;;  %v259_v30 = vld [vmem:[#allocation2] sm:$0xff] }
  0xd0   : > { %s1006_s29 = smov (!%p476_p9, %s302_s29), %s1004_s22 }
  0xd1   : > { %p477_p10 = scmp.ne.s32.totalorder %s733_s15, %s1006_s29 }
 0x13f   : > { %v245_v19 = vpop.xlane.xlu0 %244 }
 0x140   : > { %v246_v20 = vmax.f32 %v245_v19, 1e-16 }
 0x142   : > { %586 = vrsqrt.f32 %v246_v20  ;;  %vm253_vm7 = vweird.f32 %v246_v20 }
 0x148   : > { %v587_v21 = vpop.eup %586 }
 0x149   : > { %v248_v22 = vmul.f32 %v587_v21, %v246_v20  ;;  %vm254_vm6 = vweird.f32 %v587_v21 }
 0x14a   : > { %vm255_vm8 = vmor %vm253_vm7, %vm254_vm6 }
 0x14b   : > { %v249_v23 = vmul.f32 %v587_v21, %v248_v22 }
 0x14d   : > { %v250_v24 = vmul.f32 0.5, %v249_v23 }
 0x14f   : > { %v251_v25 = vsub.f32 1.5, %v250_v24 }
 0x151   : > { %v252_v26 = vmul.f32 %v587_v21, %v251_v25 }
 0x153   : > { %v256_v27 = vsel %vm255_vm8, %v587_v21, %v252_v26 }
 0x154   : > { %v257_v28 = vmul.f32 1.4142135, %v256_v27 }
 0x156   : > { %v258_v29 = vmul.f32 %v257_v28, %v240_v16 }
 0x158   : > { %472 = vmatpush.xpose.msk.msra.mxu0 %vm242_vm5, %v258_v29 }
 0x15b   : > { %473 = vmatmul.msk.f32.vlgmr.msra.gmra.mxu0 %vm242_vm5, %v259_v30 }
 0x1d4   : > { %307 = sbr.rel (%p477_p10) target bundleno = 592 (0x250), region = 44 }
 0x1d8   : > { %v283_v34 = vpop.f32.mrf.mxu0 }
 0x1d9   : > { %v308_v35 = vsel %vm290_vm9, %v283_v34, 0.0  ;;  %vm309_vm10 = vcmask 64512   ;;  %vm313_vm11 = vcmask 7168  }
 0x1da   : > { %v310_v36 = vsel %vm309_vm10, %v308_v35, 0.0 }
 0x1db   : > { %311 = vadd.xlane.f32.xlu0 %v310_v36 }
 0x24e   : > { %v312_v37 = vpop.xlane.xlu0 %311 }
 0x24f   : > { %314 = vst.msk [vmem:[#allocation5] sm:$0xff] %vm313_vm11, %v312_v37 }
 0x250 PF: > { %p315_p11 = scmp.eq.s32.totalorder %s737_s16, %s733_s15  ;;  %vm322_vm13 = vcmask 64512   ;;  %v753_v41 = vmov 0   ;;  %v321_v42 = vld [vmem:[#allocation3] sm:$0xff]  ;;  %vm344_vm15 = vcmask 7168   ;;  %v330_v53 = vld [vmem:[#allocation4] sm:$0xff]  ;;  %p478_p12 = scmp.ne.s32.totalorder %s733_s15, 1 }
 0x251   : > { %588 = vset.pattern.permute.xlu0 %v753_v41 }
 0x252   : > { %s316_s3 = scalar_select %p315_p11, 1, 0 }
 0x254   : > { %v317_v38 = vstv %s316_s3 }
 0x255   : > { %vm318_vm12 = vcmp.eq.s32.totalorder %v317_v38, 1 }
 0x256   : > { %vm319_vm14 = vmand %vm318_vm12, %vm290_vm9 }
 0x257   : > { %v320_v39 = vsel %vm319_vm14, -inf, %v283_v34 }
 0x258   : > { %v323_v40 = vsel %vm322_vm13, %v320_v39, -inf }
 0x259   : > { %324 = vmax.xlane.f32.xlu0 %v323_v40 }
 0x2cc   : > { %v325_v43 = vpop.xlane.xlu0 %324 }
 0x2cd   : > { %v326_v44 = vmax.f32 %v321_v42, %v325_v43 }
 0x2cf   : > { %v327_v45 = vsub.f32 %v321_v42, %v326_v44  ;;  %346 = vst.msk [vmem:[#allocation3] sm:$0xff] %vm344_vm15, %v326_v44  ;;  %334 = vperm.xlu0 %588, %v326_v44  }
 0x2d1   : > { %v328_v51 = vmul.f32 1.442695, %v327_v45 }
 0x341   : > { %v335_v46 = vpop.permute.xlu0 %334 }
 0x342   : > { %v337_v47 = vsub.f32 %v320_v39, %v335_v46 }
 0x344   : > { %v338_v48 = vmul.f32 1.442695, %v337_v47 }
 0x346   : > { %589 = vpow2.f32 %v338_v48 }
 0x347   : > { %591 = vpow2.f32 %v328_v51 }
 0x34c   : > { %v590_v49 = vpop.eup %589 }
 0x34d   : > { %v340_v50 = vsel %vm322_vm13, %v590_v49, 0.0  ;;  %v592_v52 = vpop.eup %591 }
 0x34e   : > { %341 = vadd.xlane.f32.xlu1 %v340_v50  ;;  %v331_v54 = vmul.f32 %v592_v52, %v330_v53 }
 0x3c0   : > { %350 = sbr.rel (%p478_p12) target bundleno = 988 (0x3dc), region = 48 }
 0x3c1   : > { %v342_v55 = vpop.xlane.xlu1 %341 }
 0x3c2   : > { %v343_v56 = vadd.f32 %v342_v55, %v331_v54 }
 0x3c4   : > { %345 = vst.msk [vmem:[#allocation4] sm:$0xff] %vm344_vm15, %v343_v56 }
 0x3c5   : > { %v351_v59 = vld [vmem:[#allocation3] sm:$0xff]  ;;  %v356_v61 = vld [vmem:[#allocation5] sm:$0xff] }
 0x3cb   : > { %v352_v57 = vld [vmem:[#allocation4] sm:$0xff] }
 0x3cc   : > { %593 = vlog2.f32 %v352_v57 }
 0x3d2   : > { %v594_v58 = vpop.eup %593 }
 0x3d3   : > { %v354_v60 = vmul.f32 0.6931472, %v594_v58 }
 0x3d5   : > { %v355_v62 = vadd.f32 %v354_v60, %v351_v59 }
 0x3d7   : > { %v357_v63 = vsub.f32 %v355_v62, %v356_v61 }
 0x3d9   : > { %v358_v0 = vmul.f32 0.0625, %v357_v63 }
 0x3db   : > { %359 = vst.msk [vmem:[%s921_s23] sm:$0xff] %vm344_vm15, %v358_v0 }
 0x3dc PF: > { %s18_s19 = sadd.s32 1, %s749_s19   ;;  %s987_s9 = smov %s713_s10 }
 0x3dd   : > { %p15_p13 = scmp.ge.s32.totalorder %s18_s19, 6   ;;  %s988_s10 = smov %s717_s11 }
 0x3de   : > { %s989_s11 = smov %s884_s27  ;;  %s990_s12 = smov %s725_s13 }
 0x3df   : > { %s991_s13 = smov %s729_s14  ;;  %s992_s14 = smov %s892_s5 }
 0x3e0   : > { %s993_s15 = smov %s741_s17  ;;  %s994_s16 = smov %s745_s18 }
 0x3e1   : > { %s995_s17 = smov %s998_s8  ;;  %s996_s18 = smov %s1002_s21 }
 0x3e2   :  { %17 = sbr.rel (!%p15_p13) target bundleno = 11 (0xb), region = 93 }
 0x3e7   :  { %379 = vsyncpa [#allocation7], 1 }
 0x3e8   :  { %381 = vsyncpa [#allocation7 + $0x1], 1 }
 0x3e9   :  { %382 = vsyncpa [#allocation9], 1 }
 0x3ea   :  { %384 = vsyncpa [#allocation9 + $0x1], 1 }

</bundles_post_ra>
